<compile_context>
chip_gen: v5e
topology: v5e:2x2
jax: 0.10.0
libtpu: 0.0.40
codegen_flags: <defaults>
</compile_context>

<pallas_src>
import functools

import jax
import jax.numpy as jnp
from jax.experimental import pallas as pl
from jax.experimental.pallas import tpu as pltpu


def _intermediate_kernel(x_ref, w_ref, b_ref, o_ref):
    # Cast the activation tile to the matmul dtype (bf16) in-kernel: cheap VPU work,
    # avoids an extra HBM pass that a wrapper-side cast would add.
    x = x_ref[...].astype(w_ref.dtype)

    # Dense: (tm, H) @ (H, I) on the MXU, f32 accumulation.
    acc = jnp.dot(x, w_ref[...], preferred_element_type=jnp.float32)
    acc = acc + b_ref[...].astype(jnp.float32)   # (1, I) broadcast, once per tile

    # Activation. HIDDEN_ACT is config-driven in the original module; tanh-approximate GELU
    # is used here (EUP tanh -> free slot).
    # TODO(synk): swap in erf-exact GELU / relu / other HIDDEN_ACT plugins as configured.
    y = jax.nn.gelu(acc, approximate=True)

    o_ref[...] = y.astype(o_ref.dtype)


def _vmem_limit_bytes(tm, H, I, x_dtype, w_dtype, o_dtype):
    x_b = jnp.dtype(x_dtype).itemsize
    w_b = jnp.dtype(w_dtype).itemsize
    o_b = jnp.dtype(o_dtype).itemsize
    est = (
        2 * tm * H * x_b      # double-buffered activation tiles
        + 2 * H * I * w_b     # weight (grid-invariant, but default double-buffered)
        + 2 * I * 4           # bias
        + 2 * tm * I * o_b    # double-buffered output tiles
    )
    est = int(est * 1.25) + (2 << 20)
    # Raise above the 16 MiB (v5e) / 32 MiB (v6e, v7x) scoped defaults, but stay within
    # v7x's 64 MiB physical VMEM so the same wrapper ports across generations.
    return max(min(est, 64 << 20), 32 << 20)


def prepare_intermediate_params(w_dense, b_dense, compute_dtype=jnp.bfloat16):
    """One-time parameter prep (call at load time, NOT per forward).

    w_dense: PyTorch Linear layout (out=INTERMEDIATE, in=HIDDEN) -> returns (HIDDEN, INTERMEDIATE)
    cast to the MXU compute dtype. Bias kept in f32 for accuracy.
    """
    w_t = jnp.asarray(w_dense).T.astype(compute_dtype)          # (H, I)
    b2d = jnp.asarray(b_dense).reshape(1, -1).astype(jnp.float32)  # (1, I)
    return w_t, b2d


@functools.partial(jax.jit, static_argnames=("tm",))
def transformer_intermediate(hidden_states, w_t, b2d, tm=256):
    """hidden_states: [B, S, H]; w_t: [H, I] (pre-transposed); b2d: [1, I]; returns [B, S, I]."""
    B, S, H = hidden_states.shape
    I = w_t.shape[1]
    assert w_t.shape[0] == H
    assert tm % 8 == 0, "row tile must be a multiple of 8 (sublane)"

    M = B * S
    x2d = hidden_states.reshape(M, H)

    # Pad token count up to a multiple of the row tile (handles ragged M); padded rows are dropped.
    M_pad = pl.cdiv(M, tm) * tm
    if M_pad != M:
        x2d = jnp.pad(x2d, ((0, M_pad - M), (0, 0)))

    out_dtype = hidden_states.dtype

    out2d = pl.pallas_call(
        _intermediate_kernel,
        out_shape=jax.ShapeDtypeStruct((M_pad, I), out_dtype),
        grid_spec=pltpu.PrefetchScalarGridSpec(
            num_scalar_prefetch=0,
            grid=(M_pad // tm,),
            in_specs=[
                pl.BlockSpec((tm, H), lambda i: (i, 0)),   # activation rows
                pl.BlockSpec((H, I), lambda i: (0, 0)),    # dense weight (resident, constant index)
                pl.BlockSpec((1, I), lambda i: (0, 0)),    # dense bias
            ],
            out_specs=pl.BlockSpec((tm, I), lambda i: (i, 0)),
        ),
        compiler_params=pltpu.CompilerParams(
            dimension_semantics=("parallel",),  # lets v7x shard row tiles across its 2 TCs
            vmem_limit_bytes=_vmem_limit_bytes(tm, H, I, x2d.dtype, w_t.dtype, out_dtype),
        ),
    )(x2d, w_t, b2d)

    return out2d[:M].reshape(B, S, I)


def _reference_f32(hidden_states, w_dense, b_dense):
    x = jnp.einsum("bsh,ih->bsi", hidden_states, w_dense) + b_dense
    return jax.nn.gelu(x, approximate=True)


if __name__ == "__main__":
    # Small config implied by the module: HIDDEN_SIZE=32, INTERMEDIATE_SIZE=128.
    B, S = 2, 8
    HIDDEN_SIZE = 32
    INTERMEDIATE_SIZE = 128

    key = jax.random.PRNGKey(0)
    k1, k2, k3 = jax.random.split(key, 3)

    hidden_states = jax.random.normal(k1, (B, S, HIDDEN_SIZE), dtype=jnp.float32)
    # PyTorch Linear weight layout: (out_features, in_features) = (I, H).
    w_dense = jax.random.normal(k2, (INTERMEDIATE_SIZE, HIDDEN_SIZE), dtype=jnp.float32) * 0.02
    b_dense = jax.random.normal(k3, (INTERMEDIATE_SIZE,), dtype=jnp.float32) * 0.02

    # One-time parameter prep (transpose + bf16 cast) OUTSIDE the jitted forward.
    w_t, b2d = prepare_intermediate_params(w_dense, b_dense, compute_dtype=jnp.bfloat16)

    out = transformer_intermediate(hidden_states, w_t, b2d, tm=256)
    out = jax.block_until_ready(out)
    assert out.shape == (B, S, INTERMEDIATE_SIZE)

    # Check 1: reference on the same bf16-quantized operands (isolates kernel bugs from bf16 rounding).
    x_bf = hidden_states.astype(jnp.bfloat16).astype(jnp.float32)
    w_bf = w_dense.astype(jnp.bfloat16).astype(jnp.float32)
    ref_bf = jax.nn.gelu(jnp.einsum("bsh,ih->bsi", x_bf, w_bf) + b_dense, approximate=True)
    assert jnp.allclose(out, ref_bf, atol=1e-4, rtol=1e-4), "mismatch vs bf16-consistent reference"

    # Check 2: full-f32 semantic reference (tolerance covers bf16 operand quantization).
    ref_f32 = _reference_f32(hidden_states, w_dense, b_dense)
    assert jnp.allclose(out, ref_f32, atol=3e-2, rtol=3e-2), "mismatch vs f32 reference"

    print("KERNEL_OK")
</pallas_src>

<mosaic_0001>
module attributes {stable_mosaic.version = 11 : i64} {
  func.func @_intermediate_kernel(%arg0: i32, %arg1: memref<256x32xf32, #tpu.memory_space<vmem>>, %arg2: memref<32x128xbf16, #tpu.memory_space<vmem>>, %arg3: memref<1x128xf32, #tpu.memory_space<vmem>>, %arg4: memref<256x128xf32, #tpu.memory_space<vmem>>) attributes {dimension_semantics = [#tpu.dimension_semantics<parallel>], iteration_bounds = array<i64: 1>, scalar_prefetch = 0 : i64, scratch_operands = 0 : i64, tpu.core_type = #tpu.core_type<tc>, window_params = [{transform_indices = @transform_0, window_bounds = array<i64: 256, 32>}, {pipeline_mode = #tpu.pipeline_mode<synchronous>, transform_indices = @transform_1, window_bounds = array<i64: 32, 128>}, {pipeline_mode = #tpu.pipeline_mode<synchronous>, transform_indices = @transform_2, window_bounds = array<i64: 1, 128>}, {transform_indices = @transform_3, window_bounds = array<i64: 256, 128>}]} {
    %c0 = arith.constant 0 : index
    %c0_0 = arith.constant 0 : index
    %0 = vector.load %arg1[%c0, %c0_0] : memref<256x32xf32, #tpu.memory_space<vmem>>, vector<256x32xf32>
    %1 = arith.truncf %0 : vector<256x32xf32> to vector<256x32xbf16>
    %c0_1 = arith.constant 0 : index
    %c0_2 = arith.constant 0 : index
    %2 = vector.load %arg2[%c0_1, %c0_2] : memref<32x128xbf16, #tpu.memory_space<vmem>>, vector<32x128xbf16>
    %cst = arith.constant dense<0.000000e+00> : vector<256x128xf32>
    %3 = tpu.matmul %1, %2, %cst {dimension_numbers = #tpu.dot_dimension_numbers<[1], [0], [0], [1], [0, 0, 1, 1], [], []>} : vector<256x32xbf16>, vector<32x128xbf16>, vector<256x128xf32> -> vector<256x128xf32>
    %c0_3 = arith.constant 0 : index
    %c0_4 = arith.constant 0 : index
    %4 = vector.load %arg3[%c0_3, %c0_4] : memref<1x128xf32, #tpu.memory_space<vmem>>, vector<1x128xf32>
    %5 = vector.broadcast %4 : vector<1x128xf32> to vector<256x128xf32>
    %6 = arith.addf %3, %5 : vector<256x128xf32>
    %7 = arith.mulf %6, %6 : vector<256x128xf32>
    %8 = arith.mulf %6, %7 : vector<256x128xf32>
    %cst_5 = arith.constant 4.471500e-02 : f32
    %9 = vector.broadcast %cst_5 : f32 to vector<256x128xf32>
    %10 = arith.mulf %9, %8 : vector<256x128xf32>
    %11 = arith.addf %6, %10 : vector<256x128xf32>
    %cst_6 = arith.constant 0.797884583 : f32
    %12 = vector.broadcast %cst_6 : f32 to vector<256x128xf32>
    %13 = arith.mulf %12, %11 : vector<256x128xf32>
    %14 = math.tanh %13 : vector<256x128xf32>
    %cst_7 = arith.constant 1.000000e+00 : f32
    %15 = vector.broadcast %cst_7 : f32 to vector<256x128xf32>
    %16 = arith.addf %15, %14 : vector<256x128xf32>
    %cst_8 = arith.constant 5.000000e-01 : f32
    %17 = vector.broadcast %cst_8 : f32 to vector<256x128xf32>
    %18 = arith.mulf %17, %16 : vector<256x128xf32>
    %19 = arith.mulf %6, %18 : vector<256x128xf32>
    %c0_9 = arith.constant 0 : index
    %c0_10 = arith.constant 0 : index
    %20 = vector.load %arg4[%c0_9, %c0_10] : memref<256x128xf32, #tpu.memory_space<vmem>>, vector<256x128xf32>
    tpu.vector_store %arg4[%c0_9, %c0_10], %19 {strides = array<i32>} : memref<256x128xf32, #tpu.memory_space<vmem>>, vector<256x128xf32>,
    return
  }
  func.func @transform_0(%arg0: i32) -> (i32, i32) {
    %c0_i32 = arith.constant 0 : i32
    %c0_i32_0 = arith.constant 0 : i32
    return %arg0, %c0_i32 : i32, i32
  }
  func.func @transform_1(%arg0: i32) -> (i32, i32) {
    %c0_i32 = arith.constant 0 : i32
    %c0_i32_0 = arith.constant 0 : i32
    %c0_i32_1 = arith.constant 0 : i32
    return %c0_i32, %c0_i32_0 : i32, i32
  }
  func.func @transform_2(%arg0: i32) -> (i32, i32) {
    %c0_i32 = arith.constant 0 : i32
    %c0_i32_0 = arith.constant 0 : i32
    %c0_i32_1 = arith.constant 0 : i32
    return %c0_i32, %c0_i32_0 : i32, i32
  }
  func.func @transform_3(%arg0: i32) -> (i32, i32) {
    %c0_i32 = arith.constant 0 : i32
    %c0_i32_0 = arith.constant 0 : i32
    return %arg0, %c0_i32 : i32, i32
  }
}

</mosaic_0001>

<bundles_post_ra>
// kernel: transformer_intermediate.1
= control target key start
LH: loop header
LB: loop body
LE: loop exit
PB: predicated region body
PF: predicated region fallthrough
CT: control target
= control target key end

     0   :  { %vm83_vm0 = vcmask 261120   ;;  %s1137_s1 = inlined_call_operand.vmem [shape: bf16[32,128], index: 1, kind: input, shape index: {}]   ;;  %s1138_s0 = inlined_call_operand.vmem [shape: f32[256,32], index: 0, kind: input, shape index: {}]   ;;  %s1139_s2 = inlined_call_operand.vmem [shape: f32[1,128], index: 2, kind: input, shape index: {}]   ;;  %s1140_s3 = inlined_call_operand.vmem [shape: f32[256,128], index: 3, kind: output, shape index: {}]  }
   0x1   :  { %v570_v0 = vld [vmem:[%s1137_s1 + $0x8] sm:$0xff]  ;;  %v569_v1 = vld [vmem:[%s1137_s1] sm:$0xff]  ;;  %v17_v14 = vld [vmem:[%s1138_s0 + $0x10] sm:$0xff] }
   0x2   :  { %v15_v2 = vld [vmem:[%s1138_s0] sm:$0xff]  ;;  %v16_v3 = vld [vmem:[%s1138_s0 + $0x8] sm:$0xff]  ;;  %138 = vmatpush.bf16.msra.mxu0 %v570_v0  ;;  %571 = vmatpush.bf16.msra.mxu1 %v570_v0  ;;  %v18_v15 = vld [vmem:[%s1138_s0 + $0x18] sm:$0xff] }
   0x3   :  { %v23_v4 = vld [vmem:[%s1138_s0 + $0x40] sm:$0xff]  ;;  %v24_v5 = vld [vmem:[%s1138_s0 + $0x48] sm:$0xff]  ;;  %572 = vmatpush.bf16.msra.mxu2 %v570_v0  ;;  %573 = vmatpush.bf16.msra.mxu3 %v570_v0  ;;  %v47_v10 = vpack.c.bf16 %v16_v3, %v15_v2  ;;  %v25_v16 = vld [vmem:[%s1138_s0 + $0x50] sm:$0xff]  ;;  %v48_v22 = vpack.c.bf16 %v18_v15, %v17_v14 }
   0x4   :  { %v31_v6 = vld [vmem:[%s1138_s0 + $0x80] sm:$0xff]  ;;  %v32_v7 = vld [vmem:[%s1138_s0 + $0x88] sm:$0xff]  ;;  %v51_v11 = vpack.c.bf16 %v24_v5, %v23_v4  ;;  %v26_v17 = vld [vmem:[%s1138_s0 + $0x58] sm:$0xff] }
   0x5   :  { %v39_v8 = vld [vmem:[%s1138_s0 + $0xc0] sm:$0xff]  ;;  %v40_v9 = vld [vmem:[%s1138_s0 + $0xc8] sm:$0xff]  ;;  %v55_v12 = vpack.c.bf16 %v32_v7, %v31_v6  ;;  %v33_v18 = vld [vmem:[%s1138_s0 + $0x90] sm:$0xff]  ;;  %v52_v23 = vpack.c.bf16 %v26_v17, %v25_v16 }
   0x6   :  { %139 = vmatpush.bf16.msra.mxu0 %v569_v1  ;;  %574 = vmatpush.bf16.msra.mxu1 %v569_v1  ;;  %v59_v13 = vpack.c.bf16 %v40_v9, %v39_v8  ;;  %v34_v19 = vld [vmem:[%s1138_s0 + $0x98] sm:$0xff]  ;;  %v41_v20 = vld [vmem:[%s1138_s0 + $0xd0] sm:$0xff]  ;;  %v19_v26 = vld [vmem:[%s1138_s0 + $0x20] sm:$0xff] }
   0x7   :  { %575 = vmatpush.bf16.msra.mxu2 %v569_v1  ;;  %576 = vmatpush.bf16.msra.mxu3 %v569_v1  ;;  %v42_v21 = vld [vmem:[%s1138_s0 + $0xd8] sm:$0xff]  ;;  %v56_v24 = vpack.c.bf16 %v34_v19, %v33_v18  ;;  %v20_v27 = vld [vmem:[%s1138_s0 + $0x28] sm:$0xff]  ;;  %v27_v28 = vld [vmem:[%s1138_s0 + $0x60] sm:$0xff] }
   0x8   :  { %v60_v25 = vpack.c.bf16 %v42_v21, %v41_v20  ;;  %v28_v29 = vld [vmem:[%s1138_s0 + $0x68] sm:$0xff]  ;;  %v35_v30 = vld [vmem:[%s1138_s0 + $0xa0] sm:$0xff]  ;;  %v49_v34 = vpack.c.bf16 %v20_v27, %v19_v26  ;;  %v21_v38 = vld [vmem:[%s1138_s0 + $0x30] sm:$0xff] }
   0x9   :  { %553 = vmatmul.msk.bf16.vlgmr.msra.gmra.mxu0 %vm83_vm0, %v47_v10  ;;  %557 = vmatmul.msk.bf16.vlgmr.msra.gmra.mxu1 %vm83_vm0, %v51_v11  ;;  %v36_v31 = vld [vmem:[%s1138_s0 + $0xa8] sm:$0xff]  ;;  %v43_v32 = vld [vmem:[%s1138_s0 + $0xe0] sm:$0xff]  ;;  %v53_v35 = vpack.c.bf16 %v28_v29, %v27_v28  ;;  %v22_v39 = vld [vmem:[%s1138_s0 + $0x38] sm:$0xff] }
   0xa   :  { %561 = vmatmul.msk.bf16.vlgmr.msra.gmra.mxu2 %vm83_vm0, %v55_v12  ;;  %565 = vmatmul.msk.bf16.vlgmr.msra.gmra.mxu3 %vm83_vm0, %v59_v13  ;;  %v44_v33 = vld [vmem:[%s1138_s0 + $0xe8] sm:$0xff]  ;;  %v57_v36 = vpack.c.bf16 %v36_v31, %v35_v30  ;;  %v29_v40 = vld [vmem:[%s1138_s0 + $0x70] sm:$0xff]  ;;  %v30_v41 = vld [vmem:[%s1138_s0 + $0x78] sm:$0xff]  ;;  %v50_v46 = vpack.c.bf16 %v22_v39, %v21_v38 }
   0xb   :  { %v61_v37 = vpack.c.bf16 %v44_v33, %v43_v32  ;;  %v37_v42 = vld [vmem:[%s1138_s0 + $0xb0] sm:$0xff]  ;;  %v38_v43 = vld [vmem:[%s1138_s0 + $0xb8] sm:$0xff]  ;;  %v54_v47 = vpack.c.bf16 %v30_v41, %v29_v40  ;;  %v783_v50 = vld [vmem:[%s1139_s2] ss:$0 sm:$0xff] }
   0xc   :  { %v45_v44 = vld [vmem:[%s1138_s0 + $0xf0] sm:$0xff]  ;;  %v46_v45 = vld [vmem:[%s1138_s0 + $0xf8] sm:$0xff]  ;;  %v58_v48 = vpack.c.bf16 %v38_v43, %v37_v42 }
   0xd   :  { %v62_v49 = vpack.c.bf16 %v46_v45, %v45_v44 }
  0x19   :  { %554 = vmatmul.msk.bf16.gmra.mxu0 %vm83_vm0, %v48_v22  ;;  %558 = vmatmul.msk.bf16.gmra.mxu1 %vm83_vm0, %v52_v23 }
  0x1a   :  { %562 = vmatmul.msk.bf16.gmra.mxu2 %vm83_vm0, %v56_v24  ;;  %566 = vmatmul.msk.bf16.gmra.mxu3 %vm83_vm0, %v60_v25 }
  0x29   :  { %555 = vmatmul.msk.bf16.gmra.mxu0 %vm83_vm0, %v49_v34  ;;  %559 = vmatmul.msk.bf16.gmra.mxu1 %vm83_vm0, %v53_v35 }
  0x2a   :  { %563 = vmatmul.msk.bf16.gmra.mxu2 %vm83_vm0, %v57_v36  ;;  %567 = vmatmul.msk.bf16.gmra.mxu3 %vm83_vm0, %v61_v37 }
  0x39   :  { %556 = vmatmul.msk.bf16.gmra.mxu0 %vm83_vm0, %v50_v46  ;;  %560 = vmatmul.msk.bf16.gmra.mxu1 %vm83_vm0, %v54_v47 }
  0x3a   :  { %564 = vmatmul.msk.bf16.gmra.mxu2 %vm83_vm0, %v58_v48  ;;  %568 = vmatmul.msk.bf16.gmra.mxu3 %vm83_vm0, %v62_v49 }
  0x86   :  { %v141_v51 = vpop.f32.mrf.mxu0  ;;  %v161_v52 = vpop.f32.mrf.mxu1 }
  0x87   :  { %v786_v53 = vadd.f32 %v783_v50, %v141_v51  ;;  %v789_v54 = vadd.f32 %v783_v50, %v161_v52 }
  0x89   :  { %v221_v55 = vmul.f32 %v786_v53, %v786_v53  ;;  %v229_v56 = vmul.f32 %v789_v54, %v789_v54 }
  0x8b   :  { %v253_v57 = vmul.f32 %v221_v55, %v786_v53  ;;  %v261_v58 = vmul.f32 %v229_v56, %v789_v54 }
  0x8d   :  { %v285_v59 = vmul.f32 0.044715, %v253_v57  ;;  %v293_v60 = vmul.f32 0.044715, %v261_v58  ;;  %v181_v61 = vpop.f32.mrf.mxu2  ;;  %v201_v62 = vpop.f32.mrf.mxu3 }
  0x8e   :  { %v798_v63 = vadd.f32 %v783_v50, %v181_v61  ;;  %v801_v0 = vadd.f32 %v783_v50, %v201_v62  ;;  %v143_v1 = vpop.f32.mrf.mxu0  ;;  %v163_v2 = vpop.f32.mrf.mxu1 }
  0x8f   :  { %v317_v3 = vadd.f32 %v285_v59, %v786_v53  ;;  %v325_v4 = vadd.f32 %v293_v60, %v789_v54  ;;  %v806_v5 = vadd.f32 %v783_v50, %v143_v1  ;;  %v809_v6 = vadd.f32 %v783_v50, %v163_v2 }
  0x90   :  { %v237_v7 = vmul.f32 %v798_v63, %v798_v63  ;;  %v245_v8 = vmul.f32 %v801_v0, %v801_v0 }
  0x91   :  { %v349_v9 = vmul.f32 0.7978846, %v317_v3  ;;  %v357_v10 = vmul.f32 0.7978846, %v325_v4  ;;  %v222_v11 = vmul.f32 %v806_v5, %v806_v5  ;;  %v230_v12 = vmul.f32 %v809_v6, %v809_v6 }
  0x92   :  { %v269_v13 = vmul.f32 %v237_v7, %v798_v63  ;;  %v277_v14 = vmul.f32 %v245_v8, %v801_v0 }
  0x93   :  { %578 = vtanh.f32 %v349_v9  ;;  %v254_v15 = vmul.f32 %v222_v11, %v806_v5  ;;  %v262_v16 = vmul.f32 %v230_v12, %v809_v6 }
  0x94   :  { %580 = vtanh.f32 %v357_v10  ;;  %v301_v17 = vmul.f32 0.044715, %v269_v13  ;;  %v309_v18 = vmul.f32 0.044715, %v277_v14 }
  0x95   :  { %v286_v19 = vmul.f32 0.044715, %v254_v15  ;;  %v294_v20 = vmul.f32 0.044715, %v262_v16  ;;  %v183_v21 = vpop.f32.mrf.mxu2  ;;  %v203_v22 = vpop.f32.mrf.mxu3 }
  0x96   :  { %v333_v23 = vadd.f32 %v301_v17, %v798_v63  ;;  %v341_v24 = vadd.f32 %v309_v18, %v801_v0  ;;  %v826_v25 = vadd.f32 %v783_v50, %v183_v21  ;;  %v829_v26 = vadd.f32 %v783_v50, %v203_v22  ;;  %v146_v27 = vpop.f32.mrf.mxu0  ;;  %v166_v28 = vpop.f32.mrf.mxu1 }
  0x97   :  { %v318_v29 = vadd.f32 %v286_v19, %v806_v5  ;;  %v326_v30 = vadd.f32 %v294_v20, %v809_v6  ;;  %v834_v31 = vadd.f32 %v783_v50, %v146_v27  ;;  %v837_v32 = vadd.f32 %v783_v50, %v166_v28 }
  0x98   :  { %v365_v33 = vmul.f32 0.7978846, %v333_v23  ;;  %v373_v34 = vmul.f32 0.7978846, %v341_v24  ;;  %v238_v35 = vmul.f32 %v826_v25, %v826_v25  ;;  %v246_v36 = vmul.f32 %v829_v26, %v829_v26 }
  0x99   :  { %v579_v37 = vpop.eup %578  ;;  %v350_v38 = vmul.f32 0.7978846, %v318_v29  ;;  %v358_v39 = vmul.f32 0.7978846, %v326_v30  ;;  %v223_v40 = vmul.f32 %v834_v31, %v834_v31  ;;  %v231_v41 = vmul.f32 %v837_v32, %v837_v32 }
  0x9a   :  { %v581_v42 = vpop.eup %580  ;;  %v413_v43 = vadd.f32 1.0, %v579_v37  ;;  %582 = vtanh.f32 %v365_v33  ;;  %v270_v44 = vmul.f32 %v238_v35, %v826_v25  ;;  %v278_v45 = vmul.f32 %v246_v36, %v829_v26 }
  0x9b   :  { %v421_v46 = vadd.f32 1.0, %v581_v42  ;;  %584 = vtanh.f32 %v373_v34  ;;  %v255_v47 = vmul.f32 %v223_v40, %v834_v31  ;;  %v263_v48 = vmul.f32 %v231_v41, %v837_v32 }
  0x9c   :  { %v445_v49 = vmul.f32 0.5, %v413_v43  ;;  %586 = vtanh.f32 %v350_v38  ;;  %v302_v51 = vmul.f32 0.044715, %v270_v44  ;;  %v310_v52 = vmul.f32 0.044715, %v278_v45 }
  0x9d   :  { %v453_v55 = vmul.f32 0.5, %v421_v46  ;;  %588 = vtanh.f32 %v358_v39  ;;  %v287_v56 = vmul.f32 0.044715, %v255_v47  ;;  %v295_v57 = vmul.f32 0.044715, %v263_v48  ;;  %v186_v58 = vpop.f32.mrf.mxu2  ;;  %v206_v59 = vpop.f32.mrf.mxu3 }
  0x9e   :  { %v477_v60 = vmul.f32 %v445_v49, %v786_v53  ;;  %v334_v61 = vadd.f32 %v302_v51, %v826_v25  ;;  %v342_v62 = vadd.f32 %v310_v52, %v829_v26  ;;  %v855_v1 = vadd.f32 %v783_v50, %v186_v58  ;;  %v148_v2 = vpop.f32.mrf.mxu0 }
  0x9f   :  { %v485_v3 = vmul.f32 %v453_v55, %v789_v54  ;;  %v319_v4 = vadd.f32 %v287_v56, %v834_v31  ;;  %v327_v7 = vadd.f32 %v295_v57, %v837_v32  ;;  %v861_v8 = vadd.f32 %v783_v50, %v206_v59  ;;  %v168_v54 = vpop.f32.mrf.mxu1 }
  0xa0   :  { %v583_v9 = vpop.eup %582  ;;  %509 = vst [vmem:[%s1140_s3] sm:$0xff] %v477_v60  ;;  %v366_v53 = vmul.f32 0.7978846, %v334_v61  ;;  %v374_v10 = vmul.f32 0.7978846, %v342_v62  ;;  %v239_v11 = vmul.f32 %v855_v1, %v855_v1  ;;  %v869_v12 = vadd.f32 %v783_v50, %v148_v2 }
  0xa1   :  { %v585_v13 = vpop.eup %584  ;;  %517 = vst [vmem:[%s1140_s3 + $0x40] sm:$0xff] %v485_v3  ;;  %v429_v14 = vadd.f32 1.0, %v583_v9  ;;  %v351_v15 = vmul.f32 0.7978846, %v319_v4  ;;  %v359_v16 = vmul.f32 0.7978846, %v327_v7  ;;  %v247_v17 = vmul.f32 %v861_v8, %v861_v8 }
  0xa2   :  { %v587_v18 = vpop.eup %586  ;;  %v437_v19 = vadd.f32 1.0, %v585_v13  ;;  %590 = vtanh.f32 %v366_v53  ;;  %v271_v20 = vmul.f32 %v239_v11, %v855_v1  ;;  %v224_v21 = vmul.f32 %v869_v12, %v869_v12 }
  0xa3   :  { %v589_v22 = vpop.eup %588  ;;  %v461_v23 = vmul.f32 0.5, %v429_v14  ;;  %v414_v24 = vadd.f32 1.0, %v587_v18  ;;  %592 = vtanh.f32 %v374_v10  ;;  %v279_v27 = vmul.f32 %v247_v17, %v861_v8 }
  0xa4   :  { %v469_v28 = vmul.f32 0.5, %v437_v19  ;;  %v422_v29 = vadd.f32 1.0, %v589_v22  ;;  %594 = vtanh.f32 %v351_v15  ;;  %v303_v30 = vmul.f32 0.044715, %v271_v20 }
  0xa5   :  { %v493_v33 = vmul.f32 %v461_v23, %v798_v63  ;;  %v446_v34 = vmul.f32 0.5, %v414_v24  ;;  %596 = vtanh.f32 %v359_v16  ;;  %v311_v35 = vmul.f32 0.044715, %v279_v27  ;;  %v188_v36 = vpop.f32.mrf.mxu2  ;;  %v208_v37 = vpop.f32.mrf.mxu3 }
  0xa6   :  { %v501_v38 = vmul.f32 %v469_v28, %v801_v0  ;;  %v454_v39 = vmul.f32 0.5, %v422_v29  ;;  %v335_v40 = vadd.f32 %v303_v30, %v855_v1  ;;  %v256_v41 = vmul.f32 %v224_v21, %v869_v12  ;;  %v151_v56 = vpop.f32.mrf.mxu0 }
  0xa7   :  { %525 = vst [vmem:[%s1140_s3 + $0x80] sm:$0xff] %v493_v33  ;;  %v478_v42 = vmul.f32 %v446_v34, %v806_v5  ;;  %v343_v63 = vadd.f32 %v311_v35, %v861_v8  ;;  %v890_v43 = vadd.f32 %v783_v50, %v168_v54  ;;  %v893_v44 = vadd.f32 %v783_v50, %v188_v36  ;;  %v171_v60 = vpop.f32.mrf.mxu1 }
  0xa8   :  { %v591_v0 = vpop.eup %590  ;;  %533 = vst [vmem:[%s1140_s3 + $0xc0] sm:$0xff] %v501_v38  ;;  %v486_v45 = vmul.f32 %v454_v39, %v809_v6  ;;  %v367_v46 = vmul.f32 0.7978846, %v335_v40  ;;  %v288_v47 = vmul.f32 0.044715, %v256_v41  ;;  %v900_v48 = vadd.f32 %v783_v50, %v208_v37 }
  0xa9   :  { %v593_v5 = vpop.eup %592  ;;  %510 = vst [vmem:[%s1140_s3 + $0x8] sm:$0xff] %v478_v42  ;;  %v430_v49 = vadd.f32 1.0, %v591_v0  ;;  %v375_v51 = vmul.f32 0.7978846, %v343_v63  ;;  %v232_v52 = vmul.f32 %v890_v43, %v890_v43  ;;  %v240_v55 = vmul.f32 %v893_v44, %v893_v44 }
  0xaa   :  { %v595_v6 = vpop.eup %594  ;;  %518 = vst [vmem:[%s1140_s3 + $0x48] sm:$0xff] %v486_v45  ;;  %v438_v57 = vadd.f32 1.0, %v593_v5  ;;  %598 = vtanh.f32 %v367_v46  ;;  %v320_v58 = vadd.f32 %v288_v47, %v869_v12  ;;  %v248_v59 = vmul.f32 %v900_v48, %v900_v48 }
  0xab   :  { %v597_v61 = vpop.eup %596  ;;  %v462_v62 = vmul.f32 0.5, %v430_v49  ;;  %v415_v2 = vadd.f32 1.0, %v595_v6  ;;  %600 = vtanh.f32 %v375_v51  ;;  %v264_v3 = vmul.f32 %v232_v52, %v890_v43 }
  0xac   :  { %v470_v4 = vmul.f32 0.5, %v438_v57  ;;  %v423_v7 = vadd.f32 1.0, %v597_v61  ;;  %v352_v9 = vmul.f32 0.7978846, %v320_v58  ;;  %v272_v53 = vmul.f32 %v240_v55, %v893_v44 }
  0xad   :  { %v494_v10 = vmul.f32 %v462_v62, %v826_v25  ;;  %v447_v11 = vmul.f32 0.5, %v415_v2  ;;  %v296_v54 = vmul.f32 0.044715, %v264_v3  ;;  %v280_v13 = vmul.f32 %v248_v59, %v900_v48  ;;  %v191_v14 = vpop.f32.mrf.mxu2  ;;  %v211_v21 = vpop.f32.mrf.mxu3 }
  0xae   :  { %v502_v15 = vmul.f32 %v470_v4, %v829_v26  ;;  %v455_v16 = vmul.f32 0.5, %v423_v7  ;;  %602 = vtanh.f32 %v352_v9  ;;  %v304_v17 = vmul.f32 0.044715, %v272_v53  ;;  %v153_v40 = vpop.f32.mrf.mxu0 }
  0xaf   :  { %526 = vst [vmem:[%s1140_s3 + $0x88] sm:$0xff] %v494_v10  ;;  %v479_v18 = vmul.f32 %v447_v11, %v834_v31  ;;  %v328_v19 = vadd.f32 %v296_v54, %v890_v43  ;;  %v312_v20 = vmul.f32 0.044715, %v280_v13  ;;  %v926_v25 = vadd.f32 %v783_v50, %v151_v56  ;;  %v173_v45 = vpop.f32.mrf.mxu1 }
  0xb0   :  { %v599_v22 = vpop.eup %598  ;;  %534 = vst [vmem:[%s1140_s3 + $0xc8] sm:$0xff] %v502_v15  ;;  %v487_v26 = vmul.f32 %v455_v16, %v837_v32  ;;  %v336_v23 = vadd.f32 %v304_v17, %v893_v44  ;;  %v934_v24 = vadd.f32 %v783_v50, %v171_v60  ;;  %v937_v31 = vadd.f32 %v783_v50, %v191_v14 }
  0xb1   :  { %v601_v27 = vpop.eup %600  ;;  %511 = vst [vmem:[%s1140_s3 + $0x10] sm:$0xff] %v479_v18  ;;  %v431_v28 = vadd.f32 1.0, %v599_v22  ;;  %v360_v29 = vmul.f32 0.7978846, %v328_v19  ;;  %v344_v30 = vadd.f32 %v312_v20, %v900_v48  ;;  %v225_v32 = vmul.f32 %v926_v25, %v926_v25 }
  0xb2   :  { %519 = vst [vmem:[%s1140_s3 + $0x50] sm:$0xff] %v487_v26  ;;  %v439_v33 = vadd.f32 1.0, %v601_v27  ;;  %v368_v34 = vmul.f32 0.7978846, %v336_v23  ;;  %v233_v35 = vmul.f32 %v934_v24, %v934_v24  ;;  %v241_v36 = vmul.f32 %v937_v31, %v937_v31 }
  0xb3   :  { %v463_v37 = vmul.f32 0.5, %v431_v28  ;;  %604 = vtanh.f32 %v360_v29  ;;  %v376_v38 = vmul.f32 0.7978846, %v344_v30  ;;  %v257_v39 = vmul.f32 %v225_v32, %v926_v25 }
  0xb4   :  { %v603_v41 = vpop.eup %602  ;;  %v471_v42 = vmul.f32 0.5, %v439_v33  ;;  %606 = vtanh.f32 %v368_v34  ;;  %v265_v63 = vmul.f32 %v233_v35, %v934_v24  ;;  %v273_v0 = vmul.f32 %v241_v36, %v937_v31 }
  0xb5   :  { %v495_v46 = vmul.f32 %v463_v37, %v855_v1  ;;  %v416_v47 = vadd.f32 1.0, %v603_v41  ;;  %608 = vtanh.f32 %v376_v38  ;;  %v289_v5 = vmul.f32 0.044715, %v257_v39  ;;  %v193_v49 = vpop.f32.mrf.mxu2  ;;  %v213_v9 = vpop.f32.mrf.mxu3 }
  0xb6   :  { %v503_v51 = vmul.f32 %v471_v42, %v861_v8  ;;  %v297_v52 = vmul.f32 0.044715, %v265_v63  ;;  %v305_v55 = vmul.f32 0.044715, %v273_v0  ;;  %v958_v56 = vadd.f32 %v783_v50, %v211_v21  ;;  %v156_v26 = vpop.f32.mrf.mxu0 }
  0xb7   :  { %527 = vst [vmem:[%s1140_s3 + $0x90] sm:$0xff] %v495_v46  ;;  %v448_v6 = vmul.f32 0.5, %v416_v47  ;;  %v321_v57 = vadd.f32 %v289_v5, %v926_v25  ;;  %v965_v1 = vadd.f32 %v783_v50, %v153_v40  ;;  %v968_v58 = vadd.f32 %v783_v50, %v173_v45  ;;  %v176_v30 = vpop.f32.mrf.mxu1 }
  0xb8   :  { %535 = vst [vmem:[%s1140_s3 + $0xd0] sm:$0xff] %v503_v51  ;;  %v329_v8 = vadd.f32 %v297_v52, %v934_v24  ;;  %v337_v59 = vadd.f32 %v305_v55, %v937_v31  ;;  %v249_v60 = vmul.f32 %v958_v56, %v958_v56  ;;  %v978_v61 = vadd.f32 %v783_v50, %v193_v49 }
  0xb9   :  { %v605_v62 = vpop.eup %604  ;;  %v480_v2 = vmul.f32 %v448_v6, %v869_v12  ;;  %v353_v3 = vmul.f32 0.7978846, %v321_v57  ;;  %v226_v4 = vmul.f32 %v965_v1, %v965_v1  ;;  %v234_v7 = vmul.f32 %v968_v58, %v968_v58 }
  0xba   :  { %v607_v53 = vpop.eup %606  ;;  %v424_v10 = vadd.f32 1.0, %v605_v62  ;;  %v361_v11 = vmul.f32 0.7978846, %v329_v8  ;;  %v369_v54 = vmul.f32 0.7978846, %v337_v59  ;;  %v281_v13 = vmul.f32 %v249_v60, %v958_v56 }
  0xbb   :  { %v609_v14 = vpop.eup %608  ;;  %512 = vst [vmem:[%s1140_s3 + $0x18] sm:$0xff] %v480_v2  ;;  %v432_v12 = vadd.f32 1.0, %v607_v53  ;;  %610 = vtanh.f32 %v353_v3  ;;  %v258_v15 = vmul.f32 %v226_v4, %v965_v1  ;;  %v266_v16 = vmul.f32 %v234_v7, %v968_v58 }
  0xbc   :  { %v456_v17 = vmul.f32 0.5, %v424_v10  ;;  %v440_v18 = vadd.f32 1.0, %v609_v14  ;;  %612 = vtanh.f32 %v361_v11  ;;  %v313_v19 = vmul.f32 0.044715, %v281_v13 }
  0xbd   :  { %v464_v20 = vmul.f32 0.5, %v432_v12  ;;  %614 = vtanh.f32 %v369_v54  ;;  %v290_v21 = vmul.f32 0.044715, %v258_v15  ;;  %v298_v22 = vmul.f32 0.044715, %v266_v16  ;;  %v196_v51 = vpop.f32.mrf.mxu2  ;;  %v216_v52 = vpop.f32.mrf.mxu3 }
  0xbe   :  { %v488_v23 = vmul.f32 %v456_v17, %v890_v43  ;;  %v472_v27 = vmul.f32 0.5, %v440_v18  ;;  %v345_v28 = vadd.f32 %v313_v19, %v958_v56  ;;  %v242_v29 = vmul.f32 %v978_v61, %v978_v61  ;;  %v158_v54 = vpop.f32.mrf.mxu0 }
  0xbf   :  { %v496_v32 = vmul.f32 %v464_v20, %v893_v44  ;;  %v322_v33 = vadd.f32 %v290_v21, %v965_v1  ;;  %v330_v34 = vadd.f32 %v298_v22, %v968_v58  ;;  %v999_v35 = vadd.f32 %v783_v50, %v213_v9 }
  0xc0   :  { %520 = vst [vmem:[%s1140_s3 + $0x58] sm:$0xff] %v488_v23  ;;  %v504_v43 = vmul.f32 %v472_v27, %v900_v48  ;;  %v377_v36 = vmul.f32 0.7978846, %v345_v28  ;;  %v274_v37 = vmul.f32 %v242_v29, %v978_v61  ;;  %v1007_v38 = vadd.f32 %v783_v50, %v156_v26 }
  0xc1   :  { %v611_v44 = vpop.eup %610  ;;  %528 = vst [vmem:[%s1140_s3 + $0x98] sm:$0xff] %v496_v32  ;;  %v354_v39 = vmul.f32 0.7978846, %v322_v33  ;;  %v362_v40 = vmul.f32 0.7978846, %v330_v34  ;;  %v250_v41 = vmul.f32 %v999_v35, %v999_v35  ;;  %v1015_v42 = vadd.f32 %v783_v50, %v176_v30  ;;  %v178_v33 = vpop.f32.mrf.mxu1 }
  0xc2   :  { %v613_v48 = vpop.eup %612  ;;  %536 = vst [vmem:[%s1140_s3 + $0xd8] sm:$0xff] %v504_v43  ;;  %v417_v63 = vadd.f32 1.0, %v611_v44  ;;  %616 = vtanh.f32 %v377_v36  ;;  %v306_v0 = vmul.f32 0.044715, %v274_v37  ;;  %v227_v45 = vmul.f32 %v1007_v38, %v1007_v38 }
  0xc3   :  { %v615_v46 = vpop.eup %614  ;;  %v425_v47 = vadd.f32 1.0, %v613_v48  ;;  %618 = vtanh.f32 %v354_v39  ;;  %v282_v5 = vmul.f32 %v250_v41, %v999_v35  ;;  %v235_v49 = vmul.f32 %v1015_v42, %v1015_v42 }
  0xc4   :  { %v449_v55 = vmul.f32 0.5, %v417_v63  ;;  %v433_v6 = vadd.f32 1.0, %v615_v46  ;;  %620 = vtanh.f32 %v362_v40  ;;  %v338_v57 = vadd.f32 %v306_v0, %v978_v61 }
  0xc5   :  { %v457_v8 = vmul.f32 0.5, %v425_v47  ;;  %v314_v59 = vmul.f32 0.044715, %v282_v5  ;;  %v259_v60 = vmul.f32 %v227_v45, %v1007_v38  ;;  %v267_v62 = vmul.f32 %v235_v49, %v1015_v42  ;;  %v198_v37 = vpop.f32.mrf.mxu2  ;;  %v218_v44 = vpop.f32.mrf.mxu3 }
  0xc6   :  { %v481_v2 = vmul.f32 %v449_v55, %v926_v25  ;;  %v465_v3 = vmul.f32 0.5, %v433_v6  ;;  %v370_v4 = vmul.f32 0.7978846, %v338_v57  ;;  %v1030_v7 = vadd.f32 %v783_v50, %v196_v51 }
  0xc7   :  { %v489_v9 = vmul.f32 %v457_v8, %v934_v24  ;;  %v346_v53 = vadd.f32 %v314_v59, %v999_v35  ;;  %v291_v10 = vmul.f32 0.044715, %v259_v60  ;;  %v299_v11 = vmul.f32 0.044715, %v267_v62 }
  0xc8   :  { %v617_v13 = vpop.eup %616  ;;  %513 = vst [vmem:[%s1140_s3 + $0x20] sm:$0xff] %v481_v2  ;;  %v497_v14 = vmul.f32 %v465_v3, %v937_v31  ;;  %622 = vtanh.f32 %v370_v4  ;;  %v243_v25 = vmul.f32 %v1030_v7, %v1030_v7  ;;  %v1041_v12 = vadd.f32 %v783_v50, %v216_v52 }
  0xc9   :  { %v619_v24 = vpop.eup %618  ;;  %521 = vst [vmem:[%s1140_s3 + $0x60] sm:$0xff] %v489_v9  ;;  %v441_v15 = vadd.f32 1.0, %v617_v13  ;;  %v378_v16 = vmul.f32 0.7978846, %v346_v53  ;;  %v323_v17 = vadd.f32 %v291_v10, %v1007_v38  ;;  %v331_v18 = vadd.f32 %v299_v11, %v1015_v42 }
  0xca   :  { %v621_v19 = vpop.eup %620  ;;  %529 = vst [vmem:[%s1140_s3 + $0xa0] sm:$0xff] %v497_v14  ;;  %v418_v31 = vadd.f32 1.0, %v619_v24  ;;  %v275_v20 = vmul.f32 %v243_v25, %v1030_v7  ;;  %v251_v21 = vmul.f32 %v1041_v12, %v1041_v12  ;;  %v1055_v22 = vadd.f32 %v783_v50, %v158_v54 }
  0xcb   :  { %v473_v26 = vmul.f32 0.5, %v441_v15  ;;  %v426_v23 = vadd.f32 1.0, %v621_v19  ;;  %624 = vtanh.f32 %v378_v16  ;;  %v355_v27 = vmul.f32 0.7978846, %v323_v17 }
  0xcc   :  { %v450_v28 = vmul.f32 0.5, %v418_v31  ;;  %v363_v29 = vmul.f32 0.7978846, %v331_v18  ;;  %v307_v30 = vmul.f32 0.044715, %v275_v20  ;;  %v283_v32 = vmul.f32 %v251_v21, %v1041_v12 }
  0xcd   :  { %v505_v34 = vmul.f32 %v473_v26, %v958_v56  ;;  %v458_v43 = vmul.f32 0.5, %v426_v23  ;;  %626 = vtanh.f32 %v355_v27  ;;  %v228_v36 = vmul.f32 %v1055_v22, %v1055_v22 }
  0xce   :  { %v623_v39 = vpop.eup %622  ;;  %v482_v40 = vmul.f32 %v450_v28, %v965_v1  ;;  %628 = vtanh.f32 %v363_v29  ;;  %v339_v41 = vadd.f32 %v307_v30, %v1030_v7  ;;  %v315_v48 = vmul.f32 0.044715, %v283_v32 }
  0xcf   :  { %537 = vst [vmem:[%s1140_s3 + $0xe0] sm:$0xff] %v505_v34  ;;  %v490_v56 = vmul.f32 %v458_v43, %v968_v58  ;;  %v434_v63 = vadd.f32 1.0, %v623_v39  ;;  %v260_v0 = vmul.f32 %v228_v36, %v1055_v22  ;;  %v1069_v45 = vadd.f32 %v783_v50, %v178_v33 }
  0xd0   :  { %514 = vst [vmem:[%s1140_s3 + $0x28] sm:$0xff] %v482_v40  ;;  %v371_v1 = vmul.f32 0.7978846, %v339_v41  ;;  %v347_v46 = vadd.f32 %v315_v48, %v1041_v12  ;;  %v1076_v47 = vadd.f32 %v783_v50, %v198_v37  ;;  %v1079_v5 = vadd.f32 %v783_v50, %v218_v44 }
  0xd1   :  { %v625_v58 = vpop.eup %624  ;;  %522 = vst [vmem:[%s1140_s3 + $0x68] sm:$0xff] %v490_v56  ;;  %v466_v49 = vmul.f32 0.5, %v434_v63  ;;  %v292_v51 = vmul.f32 0.044715, %v260_v0  ;;  %v236_v52 = vmul.f32 %v1069_v45, %v1069_v45 }
  0xd2   :  { %v442_v55 = vadd.f32 1.0, %v625_v58  ;;  %630 = vtanh.f32 %v371_v1  ;;  %v379_v6 = vmul.f32 0.7978846, %v347_v46  ;;  %v244_v57 = vmul.f32 %v1076_v47, %v1076_v47 }
  0xd3   :  { %v627_v8 = vpop.eup %626  ;;  %v498_v50 = vmul.f32 %v466_v49, %v978_v61  ;;  %v324_v59 = vadd.f32 %v292_v51, %v1055_v22  ;;  %v268_v60 = vmul.f32 %v236_v52, %v1069_v45  ;;  %v252_v62 = vmul.f32 %v1079_v5, %v1079_v5 }
  0xd4   :  { %v629_v2 = vpop.eup %628  ;;  %v474_v3 = vmul.f32 0.5, %v442_v55  ;;  %v419_v4 = vadd.f32 1.0, %v627_v8  ;;  %632 = vtanh.f32 %v379_v6  ;;  %v276_v9 = vmul.f32 %v244_v57, %v1076_v47 }
  0xd5   :  { %530 = vst [vmem:[%s1140_s3 + $0xa8] sm:$0xff] %v498_v50  ;;  %v427_v53 = vadd.f32 1.0, %v629_v2  ;;  %v356_v10 = vmul.f32 0.7978846, %v324_v59  ;;  %v300_v61 = vmul.f32 0.044715, %v268_v60  ;;  %v284_v11 = vmul.f32 %v252_v62, %v1079_v5 }
  0xd6   :  { %v506_v54 = vmul.f32 %v474_v3, %v999_v35  ;;  %v451_v13 = vmul.f32 0.5, %v419_v4  ;;  %v308_v14 = vmul.f32 0.044715, %v276_v9 }
  0xd7   :  { %v459_v25 = vmul.f32 0.5, %v427_v53  ;;  %634 = vtanh.f32 %v356_v10  ;;  %v332_v24 = vadd.f32 %v300_v61, %v1069_v45  ;;  %v316_v15 = vmul.f32 0.044715, %v284_v11 }
  0xd8   :  { %v631_v16 = vpop.eup %630  ;;  %538 = vst [vmem:[%s1140_s3 + $0xe8] sm:$0xff] %v506_v54  ;;  %v483_v17 = vmul.f32 %v451_v13, %v1007_v38  ;;  %v340_v18 = vadd.f32 %v308_v14, %v1076_v47 }
  0xd9   :  { %v491_v19 = vmul.f32 %v459_v25, %v1015_v42  ;;  %v435_v31 = vadd.f32 1.0, %v631_v16  ;;  %v364_v35 = vmul.f32 0.7978846, %v332_v24  ;;  %v348_v20 = vadd.f32 %v316_v15, %v1079_v5 }
  0xda   :  { %v633_v21 = vpop.eup %632  ;;  %515 = vst [vmem:[%s1140_s3 + $0x30] sm:$0xff] %v483_v17  ;;  %v372_v26 = vmul.f32 0.7978846, %v340_v18 }
  0xdb   :  { %523 = vst [vmem:[%s1140_s3 + $0x70] sm:$0xff] %v491_v19  ;;  %v467_v23 = vmul.f32 0.5, %v435_v31  ;;  %v443_v38 = vadd.f32 1.0, %v633_v21  ;;  %636 = vtanh.f32 %v364_v35  ;;  %v380_v27 = vmul.f32 0.7978846, %v348_v20 }
  0xdc   :  { %638 = vtanh.f32 %v372_v26 }
  0xdd   :  { %v635_v42 = vpop.eup %634  ;;  %v499_v28 = vmul.f32 %v467_v23, %v1030_v7  ;;  %v475_v29 = vmul.f32 0.5, %v443_v38  ;;  %640 = vtanh.f32 %v380_v27 }
  0xde   :  { %v420_v30 = vadd.f32 1.0, %v635_v42 }
  0xdf   :  { %531 = vst [vmem:[%s1140_s3 + $0xb0] sm:$0xff] %v499_v28  ;;  %v507_v32 = vmul.f32 %v475_v29, %v1041_v12 }
  0xe0   :  { %v452_v33 = vmul.f32 0.5, %v420_v30 }
  0xe1   :  { %v637_v34 = vpop.eup %636  ;;  %539 = vst [vmem:[%s1140_s3 + $0xf0] sm:$0xff] %v507_v32 }
  0xe2   :  { %v639_v43 = vpop.eup %638  ;;  %v484_v36 = vmul.f32 %v452_v33, %v1055_v22  ;;  %v428_v37 = vadd.f32 1.0, %v637_v34 }
  0xe3   :  { %v641_v7 = vpop.eup %640  ;;  %v436_v44 = vadd.f32 1.0, %v639_v43 }
  0xe4   :  { %516 = vst [vmem:[%s1140_s3 + $0x38] sm:$0xff] %v484_v36  ;;  %v460_v39 = vmul.f32 0.5, %v428_v37  ;;  %v444_v40 = vadd.f32 1.0, %v641_v7 }
  0xe5   :  { %v468_v41 = vmul.f32 0.5, %v436_v44 }
  0xe6   :  { %v492_v12 = vmul.f32 %v460_v39, %v1069_v45  ;;  %v476_v48 = vmul.f32 0.5, %v444_v40 }
  0xe7   :  { %v500_v56 = vmul.f32 %v468_v41, %v1076_v47 }
  0xe8   :  { %524 = vst [vmem:[%s1140_s3 + $0x78] sm:$0xff] %v492_v12  ;;  %v508_v22 = vmul.f32 %v476_v48, %v1079_v5 }
  0xe9   :  { %532 = vst [vmem:[%s1140_s3 + $0xb8] sm:$0xff] %v500_v56 }
  0xea   :  { %540 = vst [vmem:[%s1140_s3 + $0xf8] sm:$0xff] %v508_v22 }

</bundles_post_ra>
